<compile_context>
chip_gen: v6e
topology: v6e:2x2x1
jax: 0.10.0
libtpu: 0.0.40
codegen_flags: <defaults>
</compile_context>

<pallas_src>
import functools

import jax
import jax.numpy as jnp
from jax.experimental import pallas as pl
from jax.experimental.pallas import tpu as pltpu


LATENT_DIM = 32
H1 = 128
H2 = 400
H2_PAD = 512          # 400 padded up to a multiple of 128 (lane-dense)
OUT = 28 * 28         # 784
OUT_PAD = 896         # 784 padded up to a multiple of 128 (lane-dense)


def _decoder_kernel(z_ref, w1_ref, b1_ref, w2_ref, b2_ref, w3_ref, b3_ref, o_ref):
    # up1 + ReLU   (z is already in the compute dtype; accumulate in f32)
    h1 = jnp.dot(z_ref[...], w1_ref[...], preferred_element_type=jnp.float32)
    h1 = jnp.maximum(h1 + b1_ref[...], 0.0)                       # f32 VPU path
    # up2 + ReLU
    h2 = jnp.dot(h1.astype(w2_ref.dtype), w2_ref[...],
                 preferred_element_type=jnp.float32)
    h2 = jnp.maximum(h2 + b2_ref[...], 0.0)
    # up3 + Sigmoid  (padded output columns are sigmoid(0)=0.5, sliced off
    # outside the kernel)
    logits = jnp.dot(h2.astype(w3_ref.dtype), w3_ref[...],
                     preferred_element_type=jnp.float32)
    o_ref[...] = jax.nn.sigmoid(logits + b3_ref[...]).astype(o_ref.dtype)


@functools.partial(jax.jit, static_argnames=("block_b", "compute_dtype", "out_dtype"))
def decoder_ln(z, w1, b1, w2, b2, w3, b3, *,
               block_b=256,
               compute_dtype=jnp.bfloat16,
               out_dtype=jnp.float32):
    """Fused Decoder_LN forward.  Weights are (in, out); biases are (1, out)."""
    B, latent = z.shape
    assert latent == w1.shape[0]
    assert w1.shape[1] == H1 and w2.shape == (H1, H2) and w3.shape == (H2, OUT)

    # --- wrapper-side preprocessing: bf16 cast + lane-dense zero padding -----
    zc = z.astype(compute_dtype)
    w1c = w1.astype(compute_dtype)
    b1c = b1.astype(jnp.float32)
    # pad hidden dim 400 -> 512 (zeros: ReLU(0)=0 contributes nothing)
    w2c = jnp.pad(w2, ((0, 0), (0, H2_PAD - H2))).astype(compute_dtype)
    b2c = jnp.pad(b2, ((0, 0), (0, H2_PAD - H2))).astype(jnp.float32)
    # pad output dim 784 -> 896 (extra cols sliced off after the kernel)
    w3c = jnp.pad(w3, ((0, H2_PAD - H2), (0, OUT_PAD - OUT))).astype(compute_dtype)
    b3c = jnp.pad(b3, ((0, 0), (0, OUT_PAD - OUT))).astype(jnp.float32)

    # --- batch tiling --------------------------------------------------------
    block_b = min(block_b, B)
    if block_b < B:
        assert block_b % 8 == 0, "block_b must be a multiple of 8 when tiling"
    grid = (pl.cdiv(B, block_b),)

    # Weights/biases: constant index_map -> fetched once, resident across the
    # batch grid.  (Their total VMEM footprint is ~1 MiB bf16, so even the
    # default double-buffering costs negligible headroom.)
    def resident(shape):
        return pl.BlockSpec(shape, lambda i: (0,) * len(shape))

    out_padded = pl.pallas_call(
        _decoder_kernel,
        out_shape=jax.ShapeDtypeStruct((B, OUT_PAD), out_dtype),
        grid_spec=pltpu.PrefetchScalarGridSpec(
            num_scalar_prefetch=0,
            grid=grid,
            in_specs=[
                pl.BlockSpec((block_b, latent), lambda i: (i, 0)),   # z tile
                resident(w1c.shape), resident(b1c.shape),
                resident(w2c.shape), resident(b2c.shape),
                resident(w3c.shape), resident(b3c.shape),
            ],
            out_specs=pl.BlockSpec((block_b, OUT_PAD), lambda i: (i, 0)),
        ),
        compiler_params=pltpu.CompilerParams(
            dimension_semantics=("parallel",),       # megacore-shardable on v7x
            vmem_limit_bytes=32 * 1024 * 1024,       # lift v5e's 16 MiB default
        ),
    )(zc, w1c, b1c, w2c, b2c, w3c, b3c)

    return out_padded[:, :OUT]


def init_params(key, latent_dim=LATENT_DIM):
    """Deterministic synthetic init (PyTorch-Linear-like uniform scaling)."""
    ks = jax.random.split(key, 6)

    def linear(kw, kb, fan_in, fan_out):
        bound = 1.0 / jnp.sqrt(fan_in)
        w = jax.random.uniform(kw, (fan_in, fan_out), jnp.float32, -bound, bound)
        b = jax.random.uniform(kb, (1, fan_out), jnp.float32, -bound, bound)
        return w, b

    w1, b1 = linear(ks[0], ks[1], latent_dim, H1)
    w2, b2 = linear(ks[2], ks[3], H1, H2)
    w3, b3 = linear(ks[4], ks[5], H2, OUT)
    return w1, b1, w2, b2, w3, b3


def reference(z, w1, b1, w2, b2, w3, b3):
    h1 = jnp.maximum(z @ w1 + b1, 0.0)
    h2 = jnp.maximum(h1 @ w2 + b2, 0.0)
    return jax.nn.sigmoid(h2 @ w3 + b3)


if __name__ == "__main__":
    key = jax.random.PRNGKey(0)
    k_z, k_p, k_z2 = jax.random.split(key, 3)
    params = init_params(k_p)

    # Small single-tile case (B < block_b -> one grid step).
    B = 8
    z = jax.random.normal(k_z, (B, LATENT_DIM), jnp.float32)
    out = jax.block_until_ready(decoder_ln(z, *params))
    ref = reference(z, *params)
    assert out.shape == (B, OUT)
    # bf16 matmul operands -> loosened tolerance vs. the pure-f32 reference.
    assert jnp.allclose(out, ref, atol=2e-2, rtol=2e-2)

    # Multi-step grid with a ragged edge block (B not a multiple of block_b).
    B2 = 50
    z2 = jax.random.normal(k_z2, (B2, LATENT_DIM), jnp.float32)
    out2 = jax.block_until_ready(decoder_ln(z2, *params, block_b=16))
    ref2 = reference(z2, *params)
    assert out2.shape == (B2, OUT)
    assert jnp.allclose(out2, ref2, atol=2e-2, rtol=2e-2)

    print("KERNEL_OK")
</pallas_src>

<mosaic_0001>
module attributes {stable_mosaic.version = 11 : i64} {
  func.func @_decoder_kernel(%arg0: i32, %arg1: memref<8x32xbf16, #tpu.memory_space<vmem>>, %arg2: memref<32x128xbf16, #tpu.memory_space<vmem>>, %arg3: memref<1x128xf32, #tpu.memory_space<vmem>>, %arg4: memref<128x512xbf16, #tpu.memory_space<vmem>>, %arg5: memref<1x512xf32, #tpu.memory_space<vmem>>, %arg6: memref<512x896xbf16, #tpu.memory_space<vmem>>, %arg7: memref<1x896xf32, #tpu.memory_space<vmem>>, %arg8: memref<8x896xf32, #tpu.memory_space<vmem>>) attributes {dimension_semantics = [#tpu.dimension_semantics<parallel>], iteration_bounds = array<i64: 1>, scalar_prefetch = 0 : i64, scratch_operands = 0 : i64, tpu.core_type = #tpu.core_type<tc>, window_params = [{transform_indices = @transform_0, window_bounds = array<i64: 8, 32>}, {pipeline_mode = #tpu.pipeline_mode<synchronous>, transform_indices = @transform_1, window_bounds = array<i64: 32, 128>}, {pipeline_mode = #tpu.pipeline_mode<synchronous>, transform_indices = @transform_2, window_bounds = array<i64: 1, 128>}, {pipeline_mode = #tpu.pipeline_mode<synchronous>, transform_indices = @transform_3, window_bounds = array<i64: 128, 512>}, {pipeline_mode = #tpu.pipeline_mode<synchronous>, transform_indices = @transform_4, window_bounds = array<i64: 1, 512>}, {pipeline_mode = #tpu.pipeline_mode<synchronous>, transform_indices = @transform_5, window_bounds = array<i64: 512, 896>}, {pipeline_mode = #tpu.pipeline_mode<synchronous>, transform_indices = @transform_6, window_bounds = array<i64: 1, 896>}, {transform_indices = @transform_7, window_bounds = array<i64: 8, 896>}]} {
    %c0 = arith.constant 0 : index
    %c0_0 = arith.constant 0 : index
    %0 = vector.load %arg1[%c0, %c0_0] : memref<8x32xbf16, #tpu.memory_space<vmem>>, vector<8x32xbf16>
    %c0_1 = arith.constant 0 : index
    %c0_2 = arith.constant 0 : index
    %1 = vector.load %arg2[%c0_1, %c0_2] : memref<32x128xbf16, #tpu.memory_space<vmem>>, vector<32x128xbf16>
    %cst = arith.constant dense<0.000000e+00> : vector<8x128xf32>
    %2 = tpu.matmul %0, %1, %cst {dimension_numbers = #tpu.dot_dimension_numbers<[1], [0], [0], [1], [0, 0, 1, 1], [], []>} : vector<8x32xbf16>, vector<32x128xbf16>, vector<8x128xf32> -> vector<8x128xf32>
    %c0_3 = arith.constant 0 : index
    %c0_4 = arith.constant 0 : index
    %3 = vector.load %arg3[%c0_3, %c0_4] : memref<1x128xf32, #tpu.memory_space<vmem>>, vector<1x128xf32>
    %4 = vector.broadcast %3 : vector<1x128xf32> to vector<8x128xf32>
    %5 = arith.addf %2, %4 : vector<8x128xf32>
    %cst_5 = arith.constant 0.000000e+00 : f32
    %6 = vector.broadcast %cst_5 : f32 to vector<8x128xf32>
    %7 = arith.maximumf %5, %6 : vector<8x128xf32>
    %8 = arith.truncf %7 : vector<8x128xf32> to vector<8x128xbf16>
    %c0_6 = arith.constant 0 : index
    %c0_7 = arith.constant 0 : index
    %9 = vector.load %arg4[%c0_6, %c0_7] : memref<128x512xbf16, #tpu.memory_space<vmem>>, vector<128x512xbf16>
    %cst_8 = arith.constant dense<0.000000e+00> : vector<8x512xf32>
    %10 = tpu.matmul %8, %9, %cst_8 {dimension_numbers = #tpu.dot_dimension_numbers<[1], [0], [0], [1], [0, 0, 1, 1], [], []>} : vector<8x128xbf16>, vector<128x512xbf16>, vector<8x512xf32> -> vector<8x512xf32>
    %c0_9 = arith.constant 0 : index
    %c0_10 = arith.constant 0 : index
    %11 = vector.load %arg5[%c0_9, %c0_10] : memref<1x512xf32, #tpu.memory_space<vmem>>, vector<1x512xf32>
    %12 = vector.broadcast %11 : vector<1x512xf32> to vector<8x512xf32>
    %13 = arith.addf %10, %12 : vector<8x512xf32>
    %cst_11 = arith.constant 0.000000e+00 : f32
    %14 = vector.broadcast %cst_11 : f32 to vector<8x512xf32>
    %15 = arith.maximumf %13, %14 : vector<8x512xf32>
    %16 = arith.truncf %15 : vector<8x512xf32> to vector<8x512xbf16>
    %c0_12 = arith.constant 0 : index
    %c0_13 = arith.constant 0 : index
    %17 = vector.load %arg6[%c0_12, %c0_13] : memref<512x896xbf16, #tpu.memory_space<vmem>>, vector<512x896xbf16>
    %cst_14 = arith.constant dense<0.000000e+00> : vector<8x896xf32>
    %18 = tpu.matmul %16, %17, %cst_14 {dimension_numbers = #tpu.dot_dimension_numbers<[1], [0], [0], [1], [0, 0, 1, 1], [], []>} : vector<8x512xbf16>, vector<512x896xbf16>, vector<8x896xf32> -> vector<8x896xf32>
    %c0_15 = arith.constant 0 : index
    %c0_16 = arith.constant 0 : index
    %19 = vector.load %arg7[%c0_15, %c0_16] : memref<1x896xf32, #tpu.memory_space<vmem>>, vector<1x896xf32>
    %20 = vector.broadcast %19 : vector<1x896xf32> to vector<8x896xf32>
    %21 = arith.addf %18, %20 : vector<8x896xf32>
    %22 = arith.negf %21 : vector<8x896xf32>
    %23 = math.exp %22 : vector<8x896xf32>
    %cst_17 = arith.constant 1.000000e+00 : f32
    %24 = vector.broadcast %cst_17 : f32 to vector<8x896xf32>
    %25 = arith.addf %24, %23 : vector<8x896xf32>
    %26 = arith.divf %24, %25 : vector<8x896xf32>
    %c0_18 = arith.constant 0 : index
    %c0_19 = arith.constant 0 : index
    %27 = vector.load %arg8[%c0_18, %c0_19] : memref<8x896xf32, #tpu.memory_space<vmem>>, vector<8x896xf32>
    tpu.vector_store %arg8[%c0_18, %c0_19], %26 {strides = array<i32>} : memref<8x896xf32, #tpu.memory_space<vmem>>, vector<8x896xf32>,
    return
  }
  func.func @transform_0(%arg0: i32) -> (i32, i32) {
    %c0_i32 = arith.constant 0 : i32
    %c0_i32_0 = arith.constant 0 : i32
    return %arg0, %c0_i32 : i32, i32
  }
  func.func @transform_1(%arg0: i32) -> (i32, i32) {
    %c0_i32 = arith.constant 0 : i32
    %c0_i32_0 = arith.constant 0 : i32
    %c0_i32_1 = arith.constant 0 : i32
    return %c0_i32, %c0_i32_0 : i32, i32
  }
  func.func @transform_2(%arg0: i32) -> (i32, i32) {
    %c0_i32 = arith.constant 0 : i32
    %c0_i32_0 = arith.constant 0 : i32
    %c0_i32_1 = arith.constant 0 : i32
    return %c0_i32, %c0_i32_0 : i32, i32
  }
  func.func @transform_3(%arg0: i32) -> (i32, i32) {
    %c0_i32 = arith.constant 0 : i32
    %c0_i32_0 = arith.constant 0 : i32
    %c0_i32_1 = arith.constant 0 : i32
    return %c0_i32, %c0_i32_0 : i32, i32
  }
  func.func @transform_4(%arg0: i32) -> (i32, i32) {
    %c0_i32 = arith.constant 0 : i32
    %c0_i32_0 = arith.constant 0 : i32
    %c0_i32_1 = arith.constant 0 : i32
    return %c0_i32, %c0_i32_0 : i32, i32
  }
  func.func @transform_5(%arg0: i32) -> (i32, i32) {
    %c0_i32 = arith.constant 0 : i32
    %c0_i32_0 = arith.constant 0 : i32
    %c0_i32_1 = arith.constant 0 : i32
    return %c0_i32, %c0_i32_0 : i32, i32
  }
  func.func @transform_6(%arg0: i32) -> (i32, i32) {
    %c0_i32 = arith.constant 0 : i32
    %c0_i32_0 = arith.constant 0 : i32
    %c0_i32_1 = arith.constant 0 : i32
    return %c0_i32, %c0_i32_0 : i32, i32
  }
  func.func @transform_7(%arg0: i32) -> (i32, i32) {
    %c0_i32 = arith.constant 0 : i32
    %c0_i32_0 = arith.constant 0 : i32
    return %arg0, %c0_i32 : i32, i32
  }
}

</mosaic_0001>

<bundles_post_ra>
// kernel: decoder_ln.1
= control target key start
LH: loop header
LB: loop body
LE: loop exit
PB: predicated region body
PF: predicated region fallthrough
CT: control target
= control target key end

     0   :  { %v2982_v1 = vmov 0.0   ;;  %vm2983_vm0 = vmmov 0   ;;  %vm52_vm1 = vcmask 261120   ;;  %v2984_v36 = vmov 0   ;;  %s3873_s0 = inlined_call_operand.vmem [shape: bf16[8,32], index: 0, kind: input, shape index: {}]   ;;  %s3874_s1 = inlined_call_operand.vmem [shape: bf16[32,128], index: 1, kind: input, shape index: {}]   ;;  %s3875_s2 = inlined_call_operand.vmem [shape: f32[1,128], index: 2, kind: input, shape index: {}]   ;;  %s3876_s3 = inlined_call_operand.vmem [shape: bf16[128,512], index: 3, kind: input, shape index: {}]   ;;  %s3877_s4 = inlined_call_operand.vmem [shape: f32[1,512], index: 4, kind: input, shape index: {}]   ;;  %s3878_s5 = inlined_call_operand.vmem [shape: bf16[512,896], index: 5, kind: input, shape index: {}]   ;;  %s3879_s6 = inlined_call_operand.vmem [shape: f32[1,896], index: 6, kind: input, shape index: {}]   ;;  %s3880_s7 = inlined_call_operand.hbm [shape: f32[8,896], index: 7, kind: output, shape index: {}]  }
   0x1   :  { %v2562_v0 = vld [vmem:[%s3874_s1 + $0x8] sm:$0xff]   ;;  %2550 = vmatprep.subr.bf16.mxu0 %v2982_v1  ;;  %v2563_v2 = vld [vmem:[%s3874_s1] sm:$0xff]   ;;  %2554 = vmatprep.mubr.msk.bf16.mxu0 %vm2983_vm0, %v2982_v1 }
   0x2   :  { %2551 = vmatpush3.bf16.msra.mxu0 %v2562_v0  ;;  %v2564_v3 = vld [vmem:[%s3876_s3 + $0xe4] ss:$16 sps:$4 sm:$0xff]   ;;  %v28_v4 = vld [vmem:[%s3873_s0] sm:$0xf]  ;;  %v2568_v5 = vld [vmem:[%s3876_s3 + $0xec] ss:$16 sps:$4 sm:$0xff]   ;;  %344 = vmatprep.mubr.bf16.mxu1 %v2984_v36 }
   0x3   :  { %2552 = vmatprep.subr.bf16.mxu0 %v2982_v1  ;;  %v2569_v6 = vld [vmem:[%s3876_s3 + $0xe0] ss:$16 sps:$4 sm:$0xff]   ;;  %312 = vmatprep.subr.bf16.mxu1 %v2564_v3  ;;  %v2570_v7 = vld [vmem:[%s3876_s3 + $0xc4] ss:$16 sps:$4 sm:$0xff]   ;;  %v2566_v8 = vld [vmem:[%s3876_s3 + $0xe8] ss:$16 sps:$4 sm:$0xff]  }
   0x4   :  { %313 = vmatpush1.bf16.msra.mxu1 %v2569_v6  ;;  %v2574_v9 = vld [vmem:[%s3876_s3 + $0xcc] ss:$16 sps:$4 sm:$0xff]   ;;  %v2575_v10 = vld [vmem:[%s3876_s3 + $0xc0] ss:$16 sps:$4 sm:$0xff]   ;;  %v2576_v11 = vld [vmem:[%s3876_s3 + $0xa4] ss:$16 sps:$4 sm:$0xff]  }
   0x5   :  { %314 = vmatprep.subr.bf16.mxu1 %v2570_v7  ;;  %v2572_v12 = vld [vmem:[%s3876_s3 + $0xc8] ss:$16 sps:$4 sm:$0xff]   ;;  %v2580_v13 = vld [vmem:[%s3876_s3 + $0xac] ss:$16 sps:$4 sm:$0xff]   ;;  %v2581_v14 = vld [vmem:[%s3876_s3 + $0xa0] ss:$16 sps:$4 sm:$0xff]  }
   0x6   :  { %2553 = vmatpush3.bf16.msra.mxu0 %v2563_v2  ;;  %v2582_v15 = vld [vmem:[%s3876_s3 + $0x84] ss:$16 sps:$4 sm:$0xff]   ;;  %v2578_v16 = vld [vmem:[%s3876_s3 + $0xa8] ss:$16 sps:$4 sm:$0xff]   ;;  %v2587_v17 = vld [vmem:[%s3876_s3 + $0x80] ss:$16 sps:$4 sm:$0xff]  }
   0x7   :  { %353 = vmatprep.subr.bf16.mxu0 %v2568_v5  ;;  %v2586_v18 = vld [vmem:[%s3876_s3 + $0x8c] ss:$16 sps:$4 sm:$0xff]   ;;  %v2588_v19 = vld [vmem:[%s3876_s3 + $0x64] ss:$16 sps:$4 sm:$0xff]   ;;  %v2584_v20 = vld [vmem:[%s3876_s3 + $0x88] ss:$16 sps:$4 sm:$0xff]  }
   0x8   :  { %315 = vmatpush1.bf16.msra.mxu1 %v2575_v10  ;;  %v2592_v21 = vld [vmem:[%s3876_s3 + $0x6c] ss:$16 sps:$4 sm:$0xff]   ;;  %v2593_v22 = vld [vmem:[%s3876_s3 + $0x60] ss:$16 sps:$4 sm:$0xff]   ;;  %v2594_v23 = vld [vmem:[%s3876_s3 + $0x44] ss:$16 sps:$4 sm:$0xff]  }
   0x9   :  { %2555 = vmatmul.mubr.msk.bf16.vlgmr.msra.gmra.mxu0 %vm52_vm1, %v28_v4  ;;  %316 = vmatprep.subr.bf16.mxu1 %v2576_v11  ;;  %v2590_v24 = vld [vmem:[%s3876_s3 + $0x68] ss:$16 sps:$4 sm:$0xff]   ;;  %v2599_v25 = vld [vmem:[%s3876_s3 + $0x40] ss:$16 sps:$4 sm:$0xff]   ;;  %v2598_v26 = vld [vmem:[%s3876_s3 + $0x4c] ss:$16 sps:$4 sm:$0xff]  }
   0xa   :  { %354 = vmatpush1.bf16.msra.mxu0 %v2566_v8  ;;  %v2600_v27 = vld [vmem:[%s3876_s3 + $0x24] ss:$16 sps:$4 sm:$0xff]   ;;  %v2596_v28 = vld [vmem:[%s3876_s3 + $0x48] ss:$16 sps:$4 sm:$0xff]   ;;  %v2604_v29 = vld [vmem:[%s3876_s3 + $0x2c] ss:$16 sps:$4 sm:$0xff]   ;;  %385 = vmatprep.mubr.bf16.mxu0 %v2984_v36 }
   0xb   :  { %355 = vmatprep.subr.bf16.mxu0 %v2574_v9  ;;  %v2602_v30 = vld [vmem:[%s3876_s3 + $0x28] ss:$16 sps:$4 sm:$0xff]   ;;  %v2605_v31 = vld [vmem:[%s3876_s3 + $0x20] ss:$16 sps:$4 sm:$0xff]   ;;  %v2606_v32 = vld [vmem:[%s3876_s3 + $0x4] ss:$16 sps:$4 sm:$0xff]  }
   0xc   :  { %317 = vmatpush1.bf16.msra.mxu1 %v2581_v14  ;;  %v2610_v33 = vld [vmem:[%s3876_s3 + $0xc] ss:$16 sps:$4 sm:$0xff]   ;;  %v2608_v34 = vld [vmem:[%s3876_s3 + $0x8] ss:$16 sps:$4 sm:$0xff]   ;;  %v2611_v35 = vld [vmem:[%s3876_s3] ss:$16 sps:$4 sm:$0xff]  }
   0xd   :  { %318 = vmatprep.subr.bf16.mxu1 %v2582_v15  ;;  %v2614_v37 = vld [vmem:[%s3878_s5 + $0x18c] ss:$28 sps:$4 sm:$0xff]  }
   0xe   :  { %356 = vmatpush1.bf16.msra.mxu0 %v2572_v12  ;;  %v2617_v38 = vld [vmem:[%s3878_s5 + $0x50c] ss:$28 sps:$4 sm:$0xff]  }
   0xf   :  { %357 = vmatprep.subr.bf16.mxu0 %v2580_v13 }
  0x10   :  { %319 = vmatpush1.bf16.msra.mxu1 %v2587_v17 }
  0x11   :  { %320 = vmatprep.subr.bf16.mxu1 %v2588_v19 }
  0x12   :  { %358 = vmatpush1.bf16.msra.mxu0 %v2578_v16 }
  0x13   :  { %359 = vmatprep.subr.bf16.mxu0 %v2586_v18 }
  0x14   :  { %321 = vmatpush1.bf16.msra.mxu1 %v2593_v22 }
  0x15   :  { %322 = vmatprep.subr.bf16.mxu1 %v2594_v23 }
  0x16   :  { %360 = vmatpush1.bf16.msra.mxu0 %v2584_v20 }
  0x17   :  { %361 = vmatprep.subr.bf16.mxu0 %v2592_v21 }
  0x18   :  { %323 = vmatpush1.bf16.msra.mxu1 %v2599_v25 }
  0x19   :  { %324 = vmatprep.subr.bf16.mxu1 %v2600_v27 }
  0x1a   :  { %362 = vmatpush1.bf16.msra.mxu0 %v2590_v24 }
  0x1b   :  { %363 = vmatprep.subr.bf16.mxu0 %v2598_v26 }
  0x1c   :  { %325 = vmatpush1.bf16.msra.mxu1 %v2605_v31 }
  0x1d   :  { %326 = vmatprep.subr.bf16.mxu1 %v2606_v32 }
  0x1e   :  { %364 = vmatpush1.bf16.msra.mxu0 %v2596_v28 }
  0x1f   :  { %365 = vmatprep.subr.bf16.mxu0 %v2604_v29 }
  0x20   :  { %327 = vmatpush1.bf16.msra.mxu1 %v2611_v35 }
  0x21   :  { %1847 = vmatprep.subr.bf16.mxu1 %v2614_v37 }
  0x22   :  { %366 = vmatpush1.bf16.msra.mxu0 %v2602_v30 }
  0x23   :  { %367 = vmatprep.subr.bf16.mxu0 %v2610_v33 }
  0x26   :  { %368 = vmatpush1.bf16.msra.mxu0 %v2608_v34 }
  0x27   :  { %1888 = vmatprep.subr.bf16.mxu0 %v2617_v38 }
  0x28   :  { %12 = vsyncpa [#allocation3], 0  ;;  %v2236_v39 = vld [vmem:[%s3875_s2] ss:$0 sm:$0xff]  ;;  %v2612_v45 = vld [vmem:[%s3878_s5 + $0x188] ss:$28 sps:$4 sm:$0xff]  }
  0x29   :  { %v2615_v46 = vld [vmem:[%s3878_s5 + $0x508] ss:$28 sps:$4 sm:$0xff]   ;;  %v2620_v48 = vld [vmem:[%s3878_s5 + $0x154] ss:$28 sps:$4 sm:$0xff]   ;;  %v2626_v53 = vld [vmem:[%s3878_s5 + $0x11c] ss:$28 sps:$4 sm:$0xff]  }
  0x2a   :  { %v2623_v49 = vld [vmem:[%s3878_s5 + $0x4d4] ss:$28 sps:$4 sm:$0xff]   ;;  %v2629_v54 = vld [vmem:[%s3878_s5 + $0x49c] ss:$28 sps:$4 sm:$0xff]   ;;  %v2632_v57 = vld [vmem:[%s3878_s5 + $0xe4] ss:$28 sps:$4 sm:$0xff]  }
  0x2b   :  { %v2618_v51 = vld [vmem:[%s3878_s5 + $0x150] ss:$28 sps:$4 sm:$0xff]   ;;  %v2624_v55 = vld [vmem:[%s3878_s5 + $0x118] ss:$28 sps:$4 sm:$0xff]   ;;  %v2635_v58 = vld [vmem:[%s3878_s5 + $0x464] ss:$28 sps:$4 sm:$0xff]  }
  0x2c   :  { %v2621_v52 = vld [vmem:[%s3878_s5 + $0x4d0] ss:$28 sps:$4 sm:$0xff]   ;;  %v2627_v56 = vld [vmem:[%s3878_s5 + $0x498] ss:$28 sps:$4 sm:$0xff]   ;;  %v2630_v59 = vld [vmem:[%s3878_s5 + $0xe0] ss:$28 sps:$4 sm:$0xff]  }
  0x2d   :  { %v2633_v60 = vld [vmem:[%s3878_s5 + $0x460] ss:$28 sps:$4 sm:$0xff]   ;;  %v2638_v61 = vld [vmem:[%s3878_s5 + $0xac] ss:$28 sps:$4 sm:$0xff]   ;;  %v2644_v1 = vld [vmem:[%s3878_s5 + $0x74] ss:$28 sps:$4 sm:$0xff]  }
  0x2e   :  { %v2641_v62 = vld [vmem:[%s3878_s5 + $0x42c] ss:$28 sps:$4 sm:$0xff]   ;;  %v2647_v2 = vld [vmem:[%s3878_s5 + $0x3f4] ss:$28 sps:$4 sm:$0xff]   ;;  %v2650_v5 = vld [vmem:[%s3878_s5 + $0x3c] ss:$28 sps:$4 sm:$0xff]  }
  0x2f   :  { %v2636_v63 = vld [vmem:[%s3878_s5 + $0xa8] ss:$28 sps:$4 sm:$0xff]   ;;  %v2642_v3 = vld [vmem:[%s3878_s5 + $0x70] ss:$28 sps:$4 sm:$0xff]   ;;  %v2653_v6 = vld [vmem:[%s3878_s5 + $0x3bc] ss:$28 sps:$4 sm:$0xff]  }
  0x30   :  { %v2639_v0 = vld [vmem:[%s3878_s5 + $0x428] ss:$28 sps:$4 sm:$0xff]   ;;  %v2645_v4 = vld [vmem:[%s3878_s5 + $0x3f0] ss:$28 sps:$4 sm:$0xff]   ;;  %v2648_v7 = vld [vmem:[%s3878_s5 + $0x38] ss:$28 sps:$4 sm:$0xff]  }
  0x31   :  { %v2651_v8 = vld [vmem:[%s3878_s5 + $0x3b8] ss:$28 sps:$4 sm:$0xff]   ;;  %v2656_v9 = vld [vmem:[%s3878_s5 + $0x4] ss:$28 sps:$4 sm:$0xff]   ;;  %v2662_v13 = vld [vmem:[%s3878_s5 + $0x34c] ss:$28 sps:$4 sm:$0xff]  }
  0x32   :  { %v2659_v10 = vld [vmem:[%s3878_s5 + $0x384] ss:$28 sps:$4 sm:$0xff]   ;;  %v2665_v14 = vld [vmem:[%s3878_s5 + $0x6cc] ss:$28 sps:$4 sm:$0xff]   ;;  %v2668_v17 = vld [vmem:[%s3878_s5 + $0x314] ss:$28 sps:$4 sm:$0xff]  }
  0x33   :  { %v2654_v11 = vld [vmem:[%s3878_s5] ss:$28 sps:$4 sm:$0xff]   ;;  %v2660_v15 = vld [vmem:[%s3878_s5 + $0x348] ss:$28 sps:$4 sm:$0xff]   ;;  %v2671_v18 = vld [vmem:[%s3878_s5 + $0x694] ss:$28 sps:$4 sm:$0xff]  }
  0x34   :  { %v2657_v12 = vld [vmem:[%s3878_s5 + $0x380] ss:$28 sps:$4 sm:$0xff]   ;;  %v2663_v16 = vld [vmem:[%s3878_s5 + $0x6c8] ss:$28 sps:$4 sm:$0xff]   ;;  %v2666_v19 = vld [vmem:[%s3878_s5 + $0x310] ss:$28 sps:$4 sm:$0xff]  }
  0x35   :  { %v2669_v20 = vld [vmem:[%s3878_s5 + $0x690] ss:$28 sps:$4 sm:$0xff]   ;;  %v2674_v21 = vld [vmem:[%s3878_s5 + $0x2dc] ss:$28 sps:$4 sm:$0xff]   ;;  %v2680_v25 = vld [vmem:[%s3878_s5 + $0x2a4] ss:$28 sps:$4 sm:$0xff]  }
  0x36   :  { %v2677_v22 = vld [vmem:[%s3878_s5 + $0x65c] ss:$28 sps:$4 sm:$0xff]   ;;  %v2683_v26 = vld [vmem:[%s3878_s5 + $0x624] ss:$28 sps:$4 sm:$0xff]   ;;  %v2686_v29 = vld [vmem:[%s3878_s5 + $0x26c] ss:$28 sps:$4 sm:$0xff]  }
  0x37   :  { %v2672_v23 = vld [vmem:[%s3878_s5 + $0x2d8] ss:$28 sps:$4 sm:$0xff]   ;;  %v2678_v27 = vld [vmem:[%s3878_s5 + $0x2a0] ss:$28 sps:$4 sm:$0xff]   ;;  %v2689_v30 = vld [vmem:[%s3878_s5 + $0x5ec] ss:$28 sps:$4 sm:$0xff]  }
  0x38   :  { %v2675_v24 = vld [vmem:[%s3878_s5 + $0x658] ss:$28 sps:$4 sm:$0xff]   ;;  %v2681_v28 = vld [vmem:[%s3878_s5 + $0x620] ss:$28 sps:$4 sm:$0xff]   ;;  %v2684_v31 = vld [vmem:[%s3878_s5 + $0x268] ss:$28 sps:$4 sm:$0xff]  }
  0x39   :  { %v2687_v32 = vld [vmem:[%s3878_s5 + $0x5e8] ss:$28 sps:$4 sm:$0xff]   ;;  %v2692_v33 = vld [vmem:[%s3878_s5 + $0x234] ss:$28 sps:$4 sm:$0xff]   ;;  %v2698_v37 = vld [vmem:[%s3878_s5 + $0x1fc] ss:$28 sps:$4 sm:$0xff]  }
  0x3a   :  { %v2695_v34 = vld [vmem:[%s3878_s5 + $0x5b4] ss:$28 sps:$4 sm:$0xff]   ;;  %v2701_v38 = vld [vmem:[%s3878_s5 + $0x57c] ss:$28 sps:$4 sm:$0xff]  }
  0x3b   :  { %v2690_v35 = vld [vmem:[%s3878_s5 + $0x230] ss:$28 sps:$4 sm:$0xff]  }
  0x3c   :  { %v2693_v36 = vld [vmem:[%s3878_s5 + $0x5b0] ss:$28 sps:$4 sm:$0xff]  }
  0xc9   :  { %v90_v40 = vpop.f32.mrf.mxu0 }
  0xca   :  { %v91_v41 = vadd.f32 %v2236_v39, %v90_v40  ;;  %v2696_v39 = vld [vmem:[%s3878_s5 + $0x1f8] ss:$28 sps:$4 sm:$0xff]  }
  0xcb   :  { %v2556_v42 = vpop.f32.mrf.mxu0  ;;  %v2699_v40 = vld [vmem:[%s3878_s5 + $0x578] ss:$28 sps:$4 sm:$0xff]  }
  0xcc   :  { %v96_v43 = vmax.f32 %v91_v41, 0.0  ;;  %v2704_v41 = vld [vmem:[%s3878_s5 + $0x1c4] ss:$28 sps:$4 sm:$0xff]  }
  0xcd   :  { %v93_v44 = vpop.f32.mrf.mxu0  ;;  %v2707_v42 = vld [vmem:[%s3878_s5 + $0x544] ss:$28 sps:$4 sm:$0xff]  }
  0xce   :  { %v97_v47 = vpack.c.bf16 %v96_v43, %v96_v43  ;;  %v2702_v43 = vld [vmem:[%s3878_s5 + $0x1c0] ss:$28 sps:$4 sm:$0xff]  }
  0xcf   :  { %v2557_v50 = vpop.f32.mrf.mxu0  ;;  %v2705_v44 = vld [vmem:[%s3878_s5 + $0x540] ss:$28 sps:$4 sm:$0xff]  }
  0xd0   :  { %345 = vmatmul.mubr.bf16.vlgmr.msra.gmra.mxu1 %v97_v47  ;;  %386 = vmatmul.mubr.bf16.vlgmr.msra.gmra.mxu0 %v97_v47  ;;  %v132_v47 = vlaneseq }
  0xd1   :  { %1848 = vmatpush1.bf16.msra.mxu1 %v2612_v45  ;;  %1889 = vmatpush1.bf16.msra.mxu0 %v2615_v46  ;;  %v2710_v45 = vld [vmem:[%s3878_s5 + $0x194] ss:$28 sps:$4 sm:$0xff]  }
  0xd2   :  { %1849 = vmatprep.subr.bf16.mxu1 %v2620_v48  ;;  %1890 = vmatprep.subr.bf16.mxu0 %v2623_v49  ;;  %v2713_v46 = vld [vmem:[%s3878_s5 + $0x514] ss:$28 sps:$4 sm:$0xff]   ;;  %v3332_v48 = vshrl.u32 %v132_v47, 7 }
  0xd3   :  { %v2759_v47 = vld [vmem:[%s3878_s5 + $0x6d0] ss:$28 sps:$4 sm:$0xff]  }
  0xd4   :  { %v134_v49 = vsub.s32 0, %v3332_v48  ;;  %v142_v50 = vsub.s32 2, %v3332_v48 }
  0xd5   :  { %1850 = vmatpush1.bf16.msra.mxu1 %v2618_v51  ;;  %1891 = vmatpush1.bf16.msra.mxu0 %v2621_v52  ;;  %v130_v51 = vld [vmem:[%s3877_s4] sm:$0xf]  ;;  %v138_v52 = vsub.s32 1, %v3332_v48 }
  0xd6   :  { %1851 = vmatprep.subr.bf16.mxu1 %v2626_v53  ;;  %1892 = vmatprep.subr.bf16.mxu0 %v2629_v54  ;;  %v146_v53 = vsub.s32 3, %v3332_v48  ;;  %v135_v54 = vrot.slane %v130_v51, %v134_v49 }
  0xd9   :  { %1852 = vmatpush1.bf16.msra.mxu1 %v2624_v55  ;;  %1893 = vmatpush1.bf16.msra.mxu0 %v2627_v56  ;;  %v143_v55 = vrot.slane %v130_v51, %v142_v50  ;;  %v139_v56 = vrot.slane %v130_v51, %v138_v52 }
  0xda   :  { %1853 = vmatprep.subr.bf16.mxu1 %v2632_v57  ;;  %1894 = vmatprep.subr.bf16.mxu0 %v2635_v58  ;;  %v147_v57 = vrot.slane %v130_v51, %v146_v53  ;;  %v2764_v51 = vld [vmem:[%s3878_s5 + $0x31c] ss:$28 sps:$4 sm:$0xff]  }
  0xdd   :  { %1854 = vmatpush1.bf16.msra.mxu1 %v2630_v59  ;;  %1895 = vmatpush1.bf16.msra.mxu0 %v2633_v60 }
  0xde   :  { %1855 = vmatprep.subr.bf16.mxu1 %v2638_v61  ;;  %1896 = vmatprep.subr.bf16.mxu0 %v2641_v62 }
  0xe1   :  { %1856 = vmatpush1.bf16.msra.mxu1 %v2636_v63  ;;  %1897 = vmatpush1.bf16.msra.mxu0 %v2639_v0 }
  0xe2   :  { %1857 = vmatprep.subr.bf16.mxu1 %v2644_v1  ;;  %1898 = vmatprep.subr.bf16.mxu0 %v2647_v2 }
  0xe5   :  { %1858 = vmatpush1.bf16.msra.mxu1 %v2642_v3  ;;  %1899 = vmatpush1.bf16.msra.mxu0 %v2645_v4 }
  0xe6   :  { %1859 = vmatprep.subr.bf16.mxu1 %v2650_v5  ;;  %1900 = vmatprep.subr.bf16.mxu0 %v2653_v6 }
  0xe9   :  { %1860 = vmatpush1.bf16.msra.mxu1 %v2648_v7  ;;  %1901 = vmatpush1.bf16.msra.mxu0 %v2651_v8 }
  0xea   :  { %1861 = vmatprep.subr.bf16.mxu1 %v2656_v9  ;;  %1902 = vmatprep.subr.bf16.mxu0 %v2659_v10 }
  0xed   :  { %1862 = vmatpush1.bf16.msra.mxu1 %v2654_v11  ;;  %1903 = vmatpush1.bf16.msra.mxu0 %v2657_v12  ;;  %v2708_v12 = vld [vmem:[%s3878_s5 + $0x190] ss:$28 sps:$4 sm:$0xff]  }
  0xee   :  { %1863 = vmatprep.subr.bf16.mxu1 %v2662_v13  ;;  %1904 = vmatprep.subr.bf16.mxu0 %v2665_v14  ;;  %v2711_v13 = vld [vmem:[%s3878_s5 + $0x510] ss:$28 sps:$4 sm:$0xff]  }
  0xf1   :  { %1864 = vmatpush2.bf16.msra.mxu1 %v2660_v15  ;;  %1905 = vmatpush2.bf16.msra.mxu0 %v2663_v16  ;;  %v2716_v16 = vld [vmem:[%s3878_s5 + $0x15c] ss:$28 sps:$4 sm:$0xff]  }
  0xf2   :  { %1865 = vmatprep.subr.bf16.mxu1 %v2668_v17  ;;  %1906 = vmatprep.subr.bf16.mxu0 %v2671_v18  ;;  %v2719_v17 = vld [vmem:[%s3878_s5 + $0x4dc] ss:$28 sps:$4 sm:$0xff]  }
  0xf3   :  { %v2714_v18 = vld [vmem:[%s3878_s5 + $0x158] ss:$28 sps:$4 sm:$0xff]  }
  0xf5   :  { %1866 = vmatpush2.bf16.msra.mxu1 %v2666_v19  ;;  %1907 = vmatpush2.bf16.msra.mxu0 %v2669_v20  ;;  %v2717_v19 = vld [vmem:[%s3878_s5 + $0x4d8] ss:$28 sps:$4 sm:$0xff]   ;;  %v2722_v20 = vld [vmem:[%s3878_s5 + $0x124] ss:$28 sps:$4 sm:$0xff]  }
  0xf6   :  { %1867 = vmatprep.subr.bf16.mxu1 %v2674_v21  ;;  %1908 = vmatprep.subr.bf16.mxu0 %v2677_v22  ;;  %v2725_v21 = vld [vmem:[%s3878_s5 + $0x4a4] ss:$28 sps:$4 sm:$0xff]  }
  0xf7   :  { %v2720_v22 = vld [vmem:[%s3878_s5 + $0x120] ss:$28 sps:$4 sm:$0xff]  }
  0xf9   :  { %1868 = vmatpush2.bf16.msra.mxu1 %v2672_v23  ;;  %1909 = vmatpush2.bf16.msra.mxu0 %v2675_v24  ;;  %v2723_v23 = vld [vmem:[%s3878_s5 + $0x4a0] ss:$28 sps:$4 sm:$0xff]   ;;  %v2728_v24 = vld [vmem:[%s3878_s5 + $0xec] ss:$28 sps:$4 sm:$0xff]  }
  0xfa   :  { %1869 = vmatprep.subr.bf16.mxu1 %v2680_v25  ;;  %1910 = vmatprep.subr.bf16.mxu0 %v2683_v26  ;;  %v2731_v25 = vld [vmem:[%s3878_s5 + $0x46c] ss:$28 sps:$4 sm:$0xff]  }
  0xfb   :  { %v2726_v26 = vld [vmem:[%s3878_s5 + $0xe8] ss:$28 sps:$4 sm:$0xff]  }
  0xfd   :  { %1870 = vmatpush2.bf16.msra.mxu1 %v2678_v27  ;;  %1911 = vmatpush2.bf16.msra.mxu0 %v2681_v28  ;;  %v2729_v27 = vld [vmem:[%s3878_s5 + $0x468] ss:$28 sps:$4 sm:$0xff]   ;;  %v2734_v28 = vld [vmem:[%s3878_s5 + $0xb4] ss:$28 sps:$4 sm:$0xff]  }
  0xfe   :  { %1871 = vmatprep.subr.bf16.mxu1 %v2686_v29  ;;  %1912 = vmatprep.subr.bf16.mxu0 %v2689_v30  ;;  %v2737_v29 = vld [vmem:[%s3878_s5 + $0x434] ss:$28 sps:$4 sm:$0xff]  }
  0xff   :  { %v2732_v30 = vld [vmem:[%s3878_s5 + $0xb0] ss:$28 sps:$4 sm:$0xff]  }
 0x101   :  { %1872 = vmatpush2.bf16.msra.mxu1 %v2684_v31  ;;  %1913 = vmatpush2.bf16.msra.mxu0 %v2687_v32  ;;  %v2735_v31 = vld [vmem:[%s3878_s5 + $0x430] ss:$28 sps:$4 sm:$0xff]   ;;  %v2740_v32 = vld [vmem:[%s3878_s5 + $0x7c] ss:$28 sps:$4 sm:$0xff]  }
 0x102   :  { %1873 = vmatprep.subr.bf16.mxu1 %v2692_v33  ;;  %1914 = vmatprep.subr.bf16.mxu0 %v2695_v34  ;;  %v2743_v33 = vld [vmem:[%s3878_s5 + $0x3fc] ss:$28 sps:$4 sm:$0xff]  }
 0x103   :  { %v2738_v34 = vld [vmem:[%s3878_s5 + $0x78] ss:$28 sps:$4 sm:$0xff]  }
 0x105   :  { %1874 = vmatpush2.bf16.msra.mxu1 %v2690_v35  ;;  %1915 = vmatpush2.bf16.msra.mxu0 %v2693_v36  ;;  %v2741_v35 = vld [vmem:[%s3878_s5 + $0x3f8] ss:$28 sps:$4 sm:$0xff]   ;;  %v2746_v36 = vld [vmem:[%s3878_s5 + $0x44] ss:$28 sps:$4 sm:$0xff]  }
 0x106   :  { %1875 = vmatprep.subr.bf16.mxu1 %v2698_v37  ;;  %1916 = vmatprep.subr.bf16.mxu0 %v2701_v38  ;;  %v2749_v37 = vld [vmem:[%s3878_s5 + $0x3c4] ss:$28 sps:$4 sm:$0xff]  }
 0x107   :  { %v2744_v38 = vld [vmem:[%s3878_s5 + $0x40] ss:$28 sps:$4 sm:$0xff]  }
 0x109   :  { %1876 = vmatpush2.bf16.msra.mxu1 %v2696_v39  ;;  %1917 = vmatpush2.bf16.msra.mxu0 %v2699_v40  ;;  %v2747_v39 = vld [vmem:[%s3878_s5 + $0x3c0] ss:$28 sps:$4 sm:$0xff]   ;;  %v2752_v40 = vld [vmem:[%s3878_s5 + $0xc] ss:$28 sps:$4 sm:$0xff]  }
 0x10a   :  { %1877 = vmatprep.subr.bf16.mxu1 %v2704_v41  ;;  %1918 = vmatprep.subr.bf16.mxu0 %v2707_v42  ;;  %v2755_v41 = vld [vmem:[%s3878_s5 + $0x38c] ss:$28 sps:$4 sm:$0xff]  }
 0x10b   :  { %v2750_v42 = vld [vmem:[%s3878_s5 + $0x8] ss:$28 sps:$4 sm:$0xff]  }
 0x10d   :  { %1878 = vmatpush2.bf16.msra.mxu1 %v2702_v43  ;;  %1919 = vmatpush2.bf16.msra.mxu0 %v2705_v44  ;;  %v2753_v43 = vld [vmem:[%s3878_s5 + $0x388] ss:$28 sps:$4 sm:$0xff]   ;;  %v2758_v44 = vld [vmem:[%s3878_s5 + $0x354] ss:$28 sps:$4 sm:$0xff]  }
 0x10e   :  { %1929 = vmatprep.subr.bf16.mxu1 %v2710_v45  ;;  %1970 = vmatprep.subr.bf16.mxu0 %v2713_v46  ;;  %v2761_v45 = vld [vmem:[%s3878_s5 + $0x6d4] ss:$28 sps:$4 sm:$0xff]  }
 0x10f   :  { %v2756_v46 = vld [vmem:[%s3878_s5 + $0x350] ss:$28 sps:$4 sm:$0xff]  }
 0x190   :  { %v346_v58 = vpop.f32.mrf.mxu1  ;;  %v387_v59 = vpop.f32.mrf.mxu0 }
 0x191   :  { %v347_v60 = vadd.f32 %v346_v58, %v135_v54  ;;  %v388_v61 = vadd.f32 %v387_v59, %v143_v55  ;;  %v2767_v54 = vld [vmem:[%s3878_s5 + $0x69c] ss:$28 sps:$4 sm:$0xff]   ;;  %v2773_v58 = vld [vmem:[%s3878_s5 + $0x664] ss:$28 sps:$4 sm:$0xff]  }
 0x192   :  { %v348_v62 = vpop.f32.mrf.mxu1  ;;  %v389_v63 = vpop.f32.mrf.mxu0  ;;  %v2762_v55 = vld [vmem:[%s3878_s5 + $0x318] ss:$28 sps:$4 sm:$0xff]   ;;  %v2768_v59 = vld [vmem:[%s3878_s5 + $0x2e0] ss:$28 sps:$4 sm:$0xff]  }
 0x193   :  { %v349_v0 = vadd.f32 %v348_v62, %v139_v56  ;;  %v390_v1 = vadd.f32 %v389_v63, %v147_v57  ;;  %v394_v2 = vmax.f32 %v347_v60, 0.0  ;;  %v396_v3 = vmax.f32 %v388_v61, 0.0  ;;  %v2765_v56 = vld [vmem:[%s3878_s5 + $0x698] ss:$28 sps:$4 sm:$0xff]   ;;  %v2770_v57 = vld [vmem:[%s3878_s5 + $0x2e4] ss:$28 sps:$4 sm:$0xff]  }
 0x194   :  { %v350_v4 = vpop.f32.mrf.mxu1  ;;  %v391_v5 = vpop.f32.mrf.mxu0  ;;  %v2771_v60 = vld [vmem:[%s3878_s5 + $0x660] ss:$28 sps:$4 sm:$0xff]   ;;  %v2776_v61 = vld [vmem:[%s3878_s5 + $0x2ac] ss:$28 sps:$4 sm:$0xff]  }
 0x195   :  { %v395_v6 = vmax.f32 %v349_v0, 0.0  ;;  %v397_v7 = vmax.f32 %v390_v1, 0.0  ;;  %v3359_v14 = vpack.c.bf16 %v394_v2, %v394_v2  ;;  %v3361_v15 = vpack.c.bf16 %v396_v3, %v396_v3  ;;  %v2779_v62 = vld [vmem:[%s3878_s5 + $0x62c] ss:$28 sps:$4 sm:$0xff]   ;;  %v2782_v1 = vld [vmem:[%s3878_s5 + $0x274] ss:$28 sps:$4 sm:$0xff]  }
 0x196   :  { %v351_v8 = vpop.f32.mrf.mxu1  ;;  %v392_v9 = vpop.f32.mrf.mxu0  ;;  %v2774_v63 = vld [vmem:[%s3878_s5 + $0x2a8] ss:$28 sps:$4 sm:$0xff]   ;;  %v2785_v2 = vld [vmem:[%s3878_s5 + $0x5f4] ss:$28 sps:$4 sm:$0xff]   ;;  %v2788_v5 = vld [vmem:[%s3878_s5 + $0x23c] ss:$28 sps:$4 sm:$0xff]  }
 0x197   :  { %v3349_v10 = vpack.c.bf16 %v395_v6, %v395_v6  ;;  %v3351_v11 = vpack.c.bf16 %v397_v7, %v397_v7  ;;  %v2777_v0 = vld [vmem:[%s3878_s5 + $0x628] ss:$28 sps:$4 sm:$0xff]   ;;  %v2780_v3 = vld [vmem:[%s3878_s5 + $0x270] ss:$28 sps:$4 sm:$0xff]   ;;  %v2791_v6 = vld [vmem:[%s3878_s5 + $0x5bc] ss:$28 sps:$4 sm:$0xff]  }
 0x198   :  { %v2783_v4 = vld [vmem:[%s3878_s5 + $0x5f0] ss:$28 sps:$4 sm:$0xff]   ;;  %v2786_v7 = vld [vmem:[%s3878_s5 + $0x238] ss:$28 sps:$4 sm:$0xff]   ;;  %v2794_v9 = vld [vmem:[%s3878_s5 + $0x204] ss:$28 sps:$4 sm:$0xff]  }
 0x199   :  { %1879 = vmatprep.mubr.bf16.mxu1 %v3349_v10  ;;  %1920 = vmatprep.mubr.bf16.mxu0 %v3351_v11  ;;  %v2789_v8 = vld [vmem:[%s3878_s5 + $0x5b8] ss:$28 sps:$4 sm:$0xff]  }
 0x19a   :  { %1880 = vmatmul.mubr.bf16.vlgmr.msra.gmra.mxu1 %v3359_v14  ;;  %1921 = vmatmul.mubr.bf16.vlgmr.msra.gmra.mxu0 %v3361_v15 }
 0x19b   :  { %1930 = vmatpush1.bf16.msra.mxu1 %v2708_v12  ;;  %1971 = vmatpush1.bf16.msra.mxu0 %v2711_v13  ;;  %v2797_v12 = vld [vmem:[%s3878_s5 + $0x584] ss:$28 sps:$4 sm:$0xff]  }
 0x19c   :  { %1961 = vmatprep.mubr.bf16.mxu1 %v3349_v10  ;;  %2002 = vmatprep.mubr.bf16.mxu0 %v3351_v11  ;;  %v2792_v13 = vld [vmem:[%s3878_s5 + $0x200] ss:$28 sps:$4 sm:$0xff]  }
 0x19d   :  { %1931 = vmatprep.subr.bf16.mxu1 %v2716_v16  ;;  %1972 = vmatprep.subr.bf16.mxu0 %v2719_v17  ;;  %v2795_v16 = vld [vmem:[%s3878_s5 + $0x580] ss:$28 sps:$4 sm:$0xff]   ;;  %v2800_v17 = vld [vmem:[%s3878_s5 + $0x1cc] ss:$28 sps:$4 sm:$0xff]  }
 0x19f   :  { %1932 = vmatpush1.bf16.msra.mxu1 %v2714_v18  ;;  %1973 = vmatpush1.bf16.msra.mxu0 %v2717_v19  ;;  %v2803_v18 = vld [vmem:[%s3878_s5 + $0x54c] ss:$28 sps:$4 sm:$0xff]  }
 0x1a0   :  { %1933 = vmatprep.subr.bf16.mxu1 %v2722_v20  ;;  %1974 = vmatprep.subr.bf16.mxu0 %v2725_v21  ;;  %v2798_v19 = vld [vmem:[%s3878_s5 + $0x1c8] ss:$28 sps:$4 sm:$0xff]   ;;  %v2806_v21 = vld [vmem:[%s3878_s5 + $0x19c] ss:$28 sps:$4 sm:$0xff]  }
 0x1a1   :  { %v2801_v20 = vld [vmem:[%s3878_s5 + $0x548] ss:$28 sps:$4 sm:$0xff]  }
 0x1a3   :  { %1934 = vmatpush1.bf16.msra.mxu1 %v2720_v22  ;;  %1975 = vmatpush1.bf16.msra.mxu0 %v2723_v23  ;;  %v2809_v22 = vld [vmem:[%s3878_s5 + $0x51c] ss:$28 sps:$4 sm:$0xff]  }
 0x1a4   :  { %1935 = vmatprep.subr.bf16.mxu1 %v2728_v24  ;;  %1976 = vmatprep.subr.bf16.mxu0 %v2731_v25  ;;  %v2804_v23 = vld [vmem:[%s3878_s5 + $0x198] ss:$28 sps:$4 sm:$0xff]   ;;  %v2812_v25 = vld [vmem:[%s3878_s5 + $0x164] ss:$28 sps:$4 sm:$0xff]  }
 0x1a5   :  { %v2807_v24 = vld [vmem:[%s3878_s5 + $0x518] ss:$28 sps:$4 sm:$0xff]  }
 0x1a7   :  { %1936 = vmatpush1.bf16.msra.mxu1 %v2726_v26  ;;  %1977 = vmatpush1.bf16.msra.mxu0 %v2729_v27  ;;  %v2815_v26 = vld [vmem:[%s3878_s5 + $0x4e4] ss:$28 sps:$4 sm:$0xff]  }
 0x1a8   :  { %1937 = vmatprep.subr.bf16.mxu1 %v2734_v28  ;;  %1978 = vmatprep.subr.bf16.mxu0 %v2737_v29  ;;  %v2810_v27 = vld [vmem:[%s3878_s5 + $0x160] ss:$28 sps:$4 sm:$0xff]   ;;  %v2818_v29 = vld [vmem:[%s3878_s5 + $0x12c] ss:$28 sps:$4 sm:$0xff]  }
 0x1a9   :  { %v2813_v28 = vld [vmem:[%s3878_s5 + $0x4e0] ss:$28 sps:$4 sm:$0xff]  }
 0x1ab   :  { %1938 = vmatpush1.bf16.msra.mxu1 %v2732_v30  ;;  %1979 = vmatpush1.bf16.msra.mxu0 %v2735_v31  ;;  %v2821_v30 = vld [vmem:[%s3878_s5 + $0x4ac] ss:$28 sps:$4 sm:$0xff]  }
 0x1ac   :  { %1939 = vmatprep.subr.bf16.mxu1 %v2740_v32  ;;  %1980 = vmatprep.subr.bf16.mxu0 %v2743_v33  ;;  %v2816_v31 = vld [vmem:[%s3878_s5 + $0x128] ss:$28 sps:$4 sm:$0xff]   ;;  %v2824_v33 = vld [vmem:[%s3878_s5 + $0xf4] ss:$28 sps:$4 sm:$0xff]  }
 0x1ad   :  { %v2819_v32 = vld [vmem:[%s3878_s5 + $0x4a8] ss:$28 sps:$4 sm:$0xff]  }
 0x1af   :  { %1940 = vmatpush1.bf16.msra.mxu1 %v2738_v34  ;;  %1981 = vmatpush1.bf16.msra.mxu0 %v2741_v35  ;;  %v2827_v34 = vld [vmem:[%s3878_s5 + $0x474] ss:$28 sps:$4 sm:$0xff]  }
 0x1b0   :  { %1941 = vmatprep.subr.bf16.mxu1 %v2746_v36  ;;  %1982 = vmatprep.subr.bf16.mxu0 %v2749_v37  ;;  %v2822_v35 = vld [vmem:[%s3878_s5 + $0xf0] ss:$28 sps:$4 sm:$0xff]   ;;  %v2830_v37 = vld [vmem:[%s3878_s5 + $0xbc] ss:$28 sps:$4 sm:$0xff]  }
 0x1b1   :  { %v2825_v36 = vld [vmem:[%s3878_s5 + $0x470] ss:$28 sps:$4 sm:$0xff]  }
 0x1b3   :  { %1942 = vmatpush1.bf16.msra.mxu1 %v2744_v38  ;;  %1983 = vmatpush1.bf16.msra.mxu0 %v2747_v39  ;;  %v2833_v38 = vld [vmem:[%s3878_s5 + $0x43c] ss:$28 sps:$4 sm:$0xff]  }
 0x1b4   :  { %1943 = vmatprep.subr.bf16.mxu1 %v2752_v40  ;;  %1984 = vmatprep.subr.bf16.mxu0 %v2755_v41  ;;  %v2828_v39 = vld [vmem:[%s3878_s5 + $0xb8] ss:$28 sps:$4 sm:$0xff]   ;;  %v2836_v41 = vld [vmem:[%s3878_s5 + $0x84] ss:$28 sps:$4 sm:$0xff]  }
 0x1b5   :  { %v2831_v40 = vld [vmem:[%s3878_s5 + $0x438] ss:$28 sps:$4 sm:$0xff]  }
 0x1b7   :  { %1944 = vmatpush1.bf16.msra.mxu1 %v2750_v42  ;;  %1985 = vmatpush1.bf16.msra.mxu0 %v2753_v43  ;;  %v2839_v42 = vld [vmem:[%s3878_s5 + $0x404] ss:$28 sps:$4 sm:$0xff]  }
 0x1b8   :  { %1945 = vmatprep.subr.bf16.mxu1 %v2758_v44  ;;  %1986 = vmatprep.subr.bf16.mxu0 %v2761_v45  ;;  %v2834_v43 = vld [vmem:[%s3878_s5 + $0x80] ss:$28 sps:$4 sm:$0xff]   ;;  %v2842_v45 = vld [vmem:[%s3878_s5 + $0x4c] ss:$28 sps:$4 sm:$0xff]  }
 0x1b9   :  { %v2837_v44 = vld [vmem:[%s3878_s5 + $0x400] ss:$28 sps:$4 sm:$0xff]  }
 0x1bb   :  { %1946 = vmatpush2.bf16.msra.mxu1 %v2756_v46  ;;  %1987 = vmatpush2.bf16.msra.mxu0 %v2759_v47  ;;  %v2845_v46 = vld [vmem:[%s3878_s5 + $0x3cc] ss:$28 sps:$4 sm:$0xff]  }
 0x1bc   :  { %1947 = vmatprep.subr.bf16.mxu1 %v2764_v51  ;;  %1988 = vmatprep.subr.bf16.mxu0 %v2767_v54  ;;  %v2840_v47 = vld [vmem:[%s3878_s5 + $0x48] ss:$28 sps:$4 sm:$0xff]   ;;  %v2848_v54 = vld [vmem:[%s3878_s5 + $0x14] ss:$28 sps:$4 sm:$0xff]  }
 0x1bd   :  { %v2843_v51 = vld [vmem:[%s3878_s5 + $0x3c8] ss:$28 sps:$4 sm:$0xff]  }
 0x1bf   :  { %1948 = vmatpush2.bf16.msra.mxu1 %v2762_v55  ;;  %1989 = vmatpush2.bf16.msra.mxu0 %v2765_v56  ;;  %v2851_v55 = vld [vmem:[%s3878_s5 + $0x394] ss:$28 sps:$4 sm:$0xff]  }
 0x1c0   :  { %1949 = vmatprep.subr.bf16.mxu1 %v2770_v57  ;;  %1990 = vmatprep.subr.bf16.mxu0 %v2773_v58  ;;  %v2846_v56 = vld [vmem:[%s3878_s5 + $0x10] ss:$28 sps:$4 sm:$0xff]   ;;  %v2854_v58 = vld [vmem:[%s3878_s5 + $0x35c] ss:$28 sps:$4 sm:$0xff]  }
 0x1c1   :  { %v2849_v57 = vld [vmem:[%s3878_s5 + $0x390] ss:$28 sps:$4 sm:$0xff]  }
 0x1c3   :  { %1950 = vmatpush2.bf16.msra.mxu1 %v2768_v59  ;;  %1991 = vmatpush2.bf16.msra.mxu0 %v2771_v60  ;;  %v2857_v59 = vld [vmem:[%s3878_s5 + $0x6dc] ss:$28 sps:$4 sm:$0xff]  }
 0x1c4   :  { %1951 = vmatprep.subr.bf16.mxu1 %v2776_v61  ;;  %1992 = vmatprep.subr.bf16.mxu0 %v2779_v62  ;;  %v2852_v60 = vld [vmem:[%s3878_s5 + $0x358] ss:$28 sps:$4 sm:$0xff]   ;;  %v2860_v62 = vld [vmem:[%s3878_s5 + $0x324] ss:$28 sps:$4 sm:$0xff]  }
 0x1c5   :  { %v2855_v61 = vld [vmem:[%s3878_s5 + $0x6d8] ss:$28 sps:$4 sm:$0xff]  }
 0x1c7   :  { %1952 = vmatpush2.bf16.msra.mxu1 %v2774_v63  ;;  %1993 = vmatpush2.bf16.msra.mxu0 %v2777_v0  ;;  %v2863_v63 = vld [vmem:[%s3878_s5 + $0x6a4] ss:$28 sps:$4 sm:$0xff]  }
 0x1c8   :  { %1953 = vmatprep.subr.bf16.mxu1 %v2782_v1  ;;  %1994 = vmatprep.subr.bf16.mxu0 %v2785_v2  ;;  %v2858_v0 = vld [vmem:[%s3878_s5 + $0x320] ss:$28 sps:$4 sm:$0xff]   ;;  %v2866_v2 = vld [vmem:[%s3878_s5 + $0x2ec] ss:$28 sps:$4 sm:$0xff]  }
 0x1c9   :  { %v2861_v1 = vld [vmem:[%s3878_s5 + $0x6a0] ss:$28 sps:$4 sm:$0xff]  }
 0x1cb   :  { %1954 = vmatpush2.bf16.msra.mxu1 %v2780_v3  ;;  %1995 = vmatpush2.bf16.msra.mxu0 %v2783_v4  ;;  %v2869_v3 = vld [vmem:[%s3878_s5 + $0x66c] ss:$28 sps:$4 sm:$0xff]  }
 0x1cc   :  { %1955 = vmatprep.subr.bf16.mxu1 %v2788_v5  ;;  %1996 = vmatprep.subr.bf16.mxu0 %v2791_v6  ;;  %v2864_v4 = vld [vmem:[%s3878_s5 + $0x2e8] ss:$28 sps:$4 sm:$0xff]   ;;  %v2872_v6 = vld [vmem:[%s3878_s5 + $0x2b4] ss:$28 sps:$4 sm:$0xff]  }
 0x1cd   :  { %v2867_v5 = vld [vmem:[%s3878_s5 + $0x668] ss:$28 sps:$4 sm:$0xff]  }
 0x1cf   :  { %1956 = vmatpush2.bf16.msra.mxu1 %v2786_v7  ;;  %1997 = vmatpush2.bf16.msra.mxu0 %v2789_v8  ;;  %v2875_v7 = vld [vmem:[%s3878_s5 + $0x634] ss:$28 sps:$4 sm:$0xff]  }
 0x1d0   :  { %1957 = vmatprep.subr.bf16.mxu1 %v2794_v9  ;;  %1998 = vmatprep.subr.bf16.mxu0 %v2797_v12  ;;  %v2870_v8 = vld [vmem:[%s3878_s5 + $0x2b0] ss:$28 sps:$4 sm:$0xff]   ;;  %v2878_v12 = vld [vmem:[%s3878_s5 + $0x27c] ss:$28 sps:$4 sm:$0xff]  }
 0x1d1   :  { %v2873_v9 = vld [vmem:[%s3878_s5 + $0x630] ss:$28 sps:$4 sm:$0xff]  }
 0x1d3   :  { %1958 = vmatpush2.bf16.msra.mxu1 %v2792_v13  ;;  %1999 = vmatpush2.bf16.msra.mxu0 %v2795_v16  ;;  %v2881_v13 = vld [vmem:[%s3878_s5 + $0x5fc] ss:$28 sps:$4 sm:$0xff]  }
 0x1d4   :  { %1959 = vmatprep.subr.bf16.mxu1 %v2800_v17  ;;  %2000 = vmatprep.subr.bf16.mxu0 %v2803_v18  ;;  %v2876_v16 = vld [vmem:[%s3878_s5 + $0x278] ss:$28 sps:$4 sm:$0xff]   ;;  %v2884_v18 = vld [vmem:[%s3878_s5 + $0x244] ss:$28 sps:$4 sm:$0xff]  }
 0x1d5   :  { %v2879_v17 = vld [vmem:[%s3878_s5 + $0x5f8] ss:$28 sps:$4 sm:$0xff]  }
 0x1d7   :  { %1960 = vmatpush2.bf16.msra.mxu1 %v2798_v19  ;;  %2001 = vmatpush2.bf16.msra.mxu0 %v2801_v20  ;;  %v2887_v19 = vld [vmem:[%s3878_s5 + $0x5c4] ss:$28 sps:$4 sm:$0xff]  }
 0x1d8   :  { %2011 = vmatprep.subr.bf16.mxu1 %v2806_v21  ;;  %2052 = vmatprep.subr.bf16.mxu0 %v2809_v22  ;;  %v2882_v20 = vld [vmem:[%s3878_s5 + $0x240] ss:$28 sps:$4 sm:$0xff]   ;;  %v2890_v22 = vld [vmem:[%s3878_s5 + $0x20c] ss:$28 sps:$4 sm:$0xff]  }
 0x1d9   :  { %v2885_v21 = vld [vmem:[%s3878_s5 + $0x5c0] ss:$28 sps:$4 sm:$0xff]  }
 0x1da   :  { %1962 = vmatmul.mubr.bf16.vlgmr.msra.gmra.mxu1 %v3359_v14  ;;  %2003 = vmatmul.mubr.bf16.vlgmr.msra.gmra.mxu0 %v3361_v15 }
 0x1db   :  { %2012 = vmatpush1.bf16.msra.mxu1 %v2804_v23  ;;  %2043 = vmatprep.mubr.bf16.mxu1 %v3349_v10  ;;  %v2893_v23 = vld [vmem:[%s3878_s5 + $0x58c] ss:$28 sps:$4 sm:$0xff]  }
 0x1dc   :  { %2053 = vmatpush1.bf16.msra.mxu0 %v2807_v24  ;;  %2084 = vmatprep.mubr.bf16.mxu0 %v3351_v11  ;;  %v2888_v24 = vld [vmem:[%s3878_s5 + $0x208] ss:$28 sps:$4 sm:$0xff]  }
 0x1dd   :  { %2013 = vmatprep.subr.bf16.mxu1 %v2812_v25  ;;  %2054 = vmatprep.subr.bf16.mxu0 %v2815_v26  ;;  %v2891_v25 = vld [vmem:[%s3878_s5 + $0x588] ss:$28 sps:$4 sm:$0xff]   ;;  %v2896_v26 = vld [vmem:[%s3878_s5 + $0x1d4] ss:$28 sps:$4 sm:$0xff]  }
 0x1df   :  { %2014 = vmatpush1.bf16.msra.mxu1 %v2810_v27  ;;  %v2899_v27 = vld [vmem:[%s3878_s5 + $0x554] ss:$28 sps:$4 sm:$0xff]  }
 0x1e0   :  { %2055 = vmatpush1.bf16.msra.mxu0 %v2813_v28  ;;  %2015 = vmatprep.subr.bf16.mxu1 %v2818_v29  ;;  %v2894_v28 = vld [vmem:[%s3878_s5 + $0x1d0] ss:$28 sps:$4 sm:$0xff]  }
 0x1e1   :  { %2056 = vmatprep.subr.bf16.mxu0 %v2821_v30  ;;  %v2897_v29 = vld [vmem:[%s3878_s5 + $0x550] ss:$28 sps:$4 sm:$0xff]   ;;  %v2900_v30 = vld [vmem:[%s3878_s5 + $0x360] ss:$28 sps:$4 sm:$0xff]  }
 0x1e3   :  { %2016 = vmatpush1.bf16.msra.mxu1 %v2816_v31  ;;  %v2901_v31 = vld [vmem:[%s3878_s5 + $0x6e0] ss:$28 sps:$4 sm:$0xff]  }
 0x1e4   :  { %2057 = vmatpush1.bf16.msra.mxu0 %v2819_v32  ;;  %2017 = vmatprep.subr.bf16.mxu1 %v2824_v33  ;;  %v2902_v32 = vld [vmem:[%s3878_s5 + $0x1a0] ss:$28 sps:$4 sm:$0xff]  }
 0x1e5   :  { %2058 = vmatprep.subr.bf16.mxu0 %v2827_v34  ;;  %v2903_v33 = vld [vmem:[%s3878_s5 + $0x520] ss:$28 sps:$4 sm:$0xff]   ;;  %v2904_v34 = vld [vmem:[%s3878_s5 + $0x328] ss:$28 sps:$4 sm:$0xff]  }
 0x1e7   :  { %2018 = vmatpush1.bf16.msra.mxu1 %v2822_v35  ;;  %v2905_v35 = vld [vmem:[%s3878_s5 + $0x6a8] ss:$28 sps:$4 sm:$0xff]  }
 0x1e8   :  { %2059 = vmatpush1.bf16.msra.mxu0 %v2825_v36  ;;  %2019 = vmatprep.subr.bf16.mxu1 %v2830_v37  ;;  %v2906_v36 = vld [vmem:[%s3878_s5 + $0x168] ss:$28 sps:$4 sm:$0xff]  }
 0x1e9   :  { %2060 = vmatprep.subr.bf16.mxu0 %v2833_v38  ;;  %v2907_v37 = vld [vmem:[%s3878_s5 + $0x4e8] ss:$28 sps:$4 sm:$0xff]   ;;  %v2908_v38 = vld [vmem:[%s3878_s5 + $0x2f0] ss:$28 sps:$4 sm:$0xff]  }
 0x1eb   :  { %2020 = vmatpush1.bf16.msra.mxu1 %v2828_v39  ;;  %v2909_v39 = vld [vmem:[%s3878_s5 + $0x670] ss:$28 sps:$4 sm:$0xff]  }
 0x1ec   :  { %2061 = vmatpush1.bf16.msra.mxu0 %v2831_v40  ;;  %2021 = vmatprep.subr.bf16.mxu1 %v2836_v41  ;;  %v2911_v40 = vld [vmem:[%s3878_s5 + $0x4b0] ss:$28 sps:$4 sm:$0xff]   ;;  %v2913_v41 = vld [vmem:[%s3878_s5 + $0x638] ss:$28 sps:$4 sm:$0xff]  }
 0x1ed   :  { %2062 = vmatprep.subr.bf16.mxu0 %v2839_v42  ;;  %v2914_v42 = vld [vmem:[%s3878_s5 + $0xf8] ss:$28 sps:$4 sm:$0xff]  }
 0x1ef   :  { %2022 = vmatpush1.bf16.msra.mxu1 %v2834_v43  ;;  %v2915_v43 = vld [vmem:[%s3878_s5 + $0x478] ss:$28 sps:$4 sm:$0xff]  }
 0x1f0   :  { %2063 = vmatpush1.bf16.msra.mxu0 %v2837_v44  ;;  %2023 = vmatprep.subr.bf16.mxu1 %v2842_v45  ;;  %v2916_v44 = vld [vmem:[%s3878_s5 + $0x280] ss:$28 sps:$4 sm:$0xff]  }
 0x1f1   :  { %2064 = vmatprep.subr.bf16.mxu0 %v2845_v46  ;;  %v2917_v45 = vld [vmem:[%s3878_s5 + $0x600] ss:$28 sps:$4 sm:$0xff]  }
 0x1f2   :  { %v2918_v46 = vld [vmem:[%s3878_s5 + $0xc0] ss:$28 sps:$4 sm:$0xff]  }
 0x1f3   :  { %2024 = vmatpush1.bf16.msra.mxu1 %v2840_v47  ;;  %v2919_v47 = vld [vmem:[%s3878_s5 + $0x440] ss:$28 sps:$4 sm:$0xff]  }
 0x1f4   :  { %2065 = vmatpush1.bf16.msra.mxu0 %v2843_v51  ;;  %2025 = vmatprep.subr.bf16.mxu1 %v2848_v54  ;;  %v2920_v51 = vld [vmem:[%s3878_s5 + $0x248] ss:$28 sps:$4 sm:$0xff]  }
 0x1f5   :  { %2066 = vmatprep.subr.bf16.mxu0 %v2851_v55  ;;  %v2921_v54 = vld [vmem:[%s3878_s5 + $0x5c8] ss:$28 sps:$4 sm:$0xff]  }
 0x1f6   :  { %v2922_v55 = vld [vmem:[%s3878_s5 + $0x88] ss:$28 sps:$4 sm:$0xff]  }
 0x1f7   :  { %2026 = vmatpush1.bf16.msra.mxu1 %v2846_v56  ;;  %v2923_v56 = vld [vmem:[%s3878_s5 + $0x408] ss:$28 sps:$4 sm:$0xff]  }
 0x1f8   :  { %2067 = vmatpush1.bf16.msra.mxu0 %v2849_v57  ;;  %2027 = vmatprep.subr.bf16.mxu1 %v2854_v58  ;;  %v2924_v57 = vld [vmem:[%s3878_s5 + $0x210] ss:$28 sps:$4 sm:$0xff]  }
 0x1f9   :  { %2068 = vmatprep.subr.bf16.mxu0 %v2857_v59  ;;  %v2925_v58 = vld [vmem:[%s3878_s5 + $0x590] ss:$28 sps:$4 sm:$0xff]  }
 0x1fa   :  { %v2926_v59 = vld [vmem:[%s3878_s5 + $0x50] ss:$28 sps:$4 sm:$0xff]  }
 0x1fb   :  { %2028 = vmatpush2.bf16.msra.mxu1 %v2852_v60  ;;  %v2927_v60 = vld [vmem:[%s3878_s5 + $0x3d0] ss:$28 sps:$4 sm:$0xff]  }
 0x1fc   :  { %2069 = vmatpush2.bf16.msra.mxu0 %v2855_v61  ;;  %2029 = vmatprep.subr.bf16.mxu1 %v2860_v62  ;;  %v2928_v61 = vld [vmem:[%s3878_s5 + $0x1d8] ss:$28 sps:$4 sm:$0xff]  }
 0x1fd   :  { %2070 = vmatprep.subr.bf16.mxu0 %v2863_v63  ;;  %v2929_v62 = vld [vmem:[%s3878_s5 + $0x558] ss:$28 sps:$4 sm:$0xff]  }
 0x1fe   :  { %v2930_v63 = vld [vmem:[%s3878_s5 + $0x18] ss:$28 sps:$4 sm:$0xff]  }
 0x1ff   :  { %2030 = vmatpush2.bf16.msra.mxu1 %v2858_v0  ;;  %v2931_v0 = vld [vmem:[%s3878_s5 + $0x398] ss:$28 sps:$4 sm:$0xff]  }
 0x200   :  { %2071 = vmatpush2.bf16.msra.mxu0 %v2861_v1  ;;  %2031 = vmatprep.subr.bf16.mxu1 %v2866_v2  ;;  %v3850_v1 = vld [vmem:[%s3879_s6] sm:$0xff] }
 0x201   :  { %2072 = vmatprep.subr.bf16.mxu0 %v2869_v3  ;;  %v663_v2 = vrot.slane %v3850_v1, %v134_v49  ;;  %v667_v3 = vrot.slane %v3850_v1, %v138_v52 }
 0x203   :  { %2032 = vmatpush2.bf16.msra.mxu1 %v2864_v4 }
 0x204   :  { %2073 = vmatpush2.bf16.msra.mxu0 %v2867_v5  ;;  %2033 = vmatprep.subr.bf16.mxu1 %v2872_v6 }
 0x205   :  { %2074 = vmatprep.subr.bf16.mxu0 %v2875_v7 }
 0x207   :  { %2034 = vmatpush2.bf16.msra.mxu1 %v2870_v8 }
 0x208   :  { %2075 = vmatpush2.bf16.msra.mxu0 %v2873_v9  ;;  %2035 = vmatprep.subr.bf16.mxu1 %v2878_v12 }
 0x209   :  { %2076 = vmatprep.subr.bf16.mxu0 %v2881_v13 }
 0x20b   :  { %2036 = vmatpush2.bf16.msra.mxu1 %v2876_v16 }
 0x20c   :  { %2077 = vmatpush2.bf16.msra.mxu0 %v2879_v17  ;;  %2037 = vmatprep.subr.bf16.mxu1 %v2884_v18 }
 0x20d   :  { %2078 = vmatprep.subr.bf16.mxu0 %v2887_v19 }
 0x20f   :  { %2038 = vmatpush2.bf16.msra.mxu1 %v2882_v20 }
 0x210   :  { %2079 = vmatpush2.bf16.msra.mxu0 %v2885_v21  ;;  %2039 = vmatprep.subr.bf16.mxu1 %v2890_v22 }
 0x211   :  { %2080 = vmatprep.subr.bf16.mxu0 %v2893_v23 }
 0x213   :  { %2040 = vmatpush2.bf16.msra.mxu1 %v2888_v24  ;;  %v671_v24 = vrot.slane %v3850_v1, %v142_v50 }
 0x214   :  { %2081 = vmatpush2.bf16.msra.mxu0 %v2891_v25  ;;  %2041 = vmatprep.subr.bf16.mxu1 %v2896_v26  ;;  %v675_v25 = vrot.slane %v3850_v1, %v146_v53 }
 0x215   :  { %2082 = vmatprep.subr.bf16.mxu0 %v2899_v27 }
 0x217   :  { %2042 = vmatpush2.bf16.msra.mxu1 %v2894_v28 }
 0x218   :  { %2083 = vmatpush2.bf16.msra.mxu0 %v2897_v29  ;;  %2506 = vmatprep.subr.bf16.mxu1 %v2900_v30 }
 0x219   :  { %2528 = vmatprep.subr.bf16.mxu0 %v2901_v31 }
 0x21a   :  { %2044 = vmatmul.mubr.bf16.vlgmr.msra.gmra.mxu1 %v3359_v14 }
 0x21b   :  { %2085 = vmatmul.mubr.bf16.vlgmr.msra.gmra.mxu0 %v3361_v15  ;;  %2507 = vmatpush3.bf16.msra.mxu1 %v2902_v32 }
 0x21c   :  { %2125 = vmatprep.mubr.bf16.mxu1 %v3349_v10  ;;  %2529 = vmatpush3.bf16.msra.mxu0 %v2903_v33  ;;  %v2910_v10 = vld [vmem:[%s3878_s5 + $0x130] ss:$28 sps:$4 sm:$0xff]  }
 0x21d   :  { %2165 = vmatprep.mubr.bf16.mxu0 %v3351_v11  ;;  %2508 = vmatprep.subr.bf16.mxu1 %v2904_v34  ;;  %v2912_v11 = vld [vmem:[%s3878_s5 + $0x2b8] ss:$28 sps:$4 sm:$0xff]   ;;  %s2985_s5 = smov [#allocation2]  }
 0x21e   :  { %2530 = vmatprep.subr.bf16.mxu0 %v2905_v35  ;;  %s2228_s6 = sshll.u32 %s2985_s5, 4  ;;  %s2229_s6 = int_to_ptr.vmem [resolvable:$true] %s2228_s6 }
 0x21f   :  { %2509 = vmatpush3.bf16.msra.mxu1 %v2906_v36  ;;  %s2960_s28 = scalar_lea.vmem %s2229_s6, 896  ;;  %p2965_p1 = scmp.lt.s32.totalorder %s2229_s6, %s2229_s6 }
 0x220   :  { %2531 = vmatpush3.bf16.msra.mxu0 %v2907_v37  ;;  %2510 = vmatprep.subr.bf16.mxu1 %v2908_v38  ;;  %p2961_p0 = scmp.ne.s32.totalorder %s2229_s6, %s2960_s28  ;;  %p2966_p2 = scmp.lt.s32.totalorder %s2960_s28, %s2960_s28 }
 0x221   :  { %2532 = vmatprep.subr.bf16.mxu0 %v2909_v39 }
 0x222   :  { %p2967_p3 = por %p2966_p2, %p2965_p1 }
 0x223   :  { %2511 = vmatpush3.bf16.msra.mxu1 %v2910_v10 }
 0x224   :  { %2533 = vmatpush3.bf16.msra.mxu0 %v2911_v40  ;;  %2512 = vmatprep.subr.bf16.mxu1 %v2912_v11  ;;  %p2968_p4 = pnand %p2967_p3, %p2961_p0 }
 0x225   :  { %2534 = vmatprep.subr.bf16.mxu0 %v2913_v41 }
 0x227   :  { %2513 = vmatpush3.bf16.msra.mxu1 %v2914_v42  ;;  %v678_v42 = vsub.s32 4, %v3332_v48 }
 0x228   :  { %2535 = vmatpush3.bf16.msra.mxu0 %v2915_v43  ;;  %2514 = vmatprep.subr.bf16.mxu1 %v2916_v44  ;;  %v682_v43 = vsub.s32 5, %v3332_v48 }
 0x229   :  { %2536 = vmatprep.subr.bf16.mxu0 %v2917_v45  ;;  %v679_v44 = vrot.slane %v3850_v1, %v678_v42 }
 0x22a   :  { %v683_v45 = vrot.slane %v3850_v1, %v682_v43 }
 0x22b   :  { %2515 = vmatpush3.bf16.msra.mxu1 %v2918_v46 }
 0x22c   :  { %2537 = vmatpush3.bf16.msra.mxu0 %v2919_v47  ;;  %2516 = vmatprep.subr.bf16.mxu1 %v2920_v51 }
 0x22d   :  { %2538 = vmatprep.subr.bf16.mxu0 %v2921_v54 }
 0x22f   :  { %2517 = vmatpush3.bf16.msra.mxu1 %v2922_v55 }
 0x230   :  { %2539 = vmatpush3.bf16.msra.mxu0 %v2923_v56  ;;  %2518 = vmatprep.subr.bf16.mxu1 %v2924_v57 }
 0x231   :  { %2540 = vmatprep.subr.bf16.mxu0 %v2925_v58 }
 0x233   :  { %2519 = vmatpush3.bf16.msra.mxu1 %v2926_v59 }
 0x234   :  { %2541 = vmatpush3.bf16.msra.mxu0 %v2927_v60  ;;  %2520 = vmatprep.subr.bf16.mxu1 %v2928_v61 }
 0x235   :  { %2542 = vmatprep.subr.bf16.mxu0 %v2929_v62 }
 0x237   :  { %2521 = vmatpush3.bf16.msra.mxu1 %v2930_v63 }
 0x238   :  { %2543 = vmatpush3.bf16.msra.mxu0 %v2931_v0 }
 0x23a   :  { %2126 = vmatmul.mubr.bf16.vlgmr.msra.gmra.mxu1 %v3359_v14 }
 0x23b   :  { %2166 = vmatmul.mubr.bf16.vlgmr.msra.gmra.mxu0 %v3361_v15 }
 0x25a   :  { %v1881_v4 = vpop.f32.mrf.mxu1  ;;  %v1922_v5 = vpop.f32.mrf.mxu0 }
 0x25b   :  { %v1882_v6 = vadd.f32 %v1881_v4, %v663_v2 }
 0x25c   :  { %v1883_v7 = vpop.f32.mrf.mxu1  ;;  %v1924_v14 = vpop.f32.mrf.mxu0 }
 0x25d   :  { %v1923_v8 = vadd.f32 %v1922_v5, %v1882_v6  ;;  %v1884_v15 = vadd.f32 %v1883_v7, %v667_v3  ;;  %v686_v6 = vsub.s32 6, %v3332_v48 }
 0x25e   :  { %v1885_v9 = vpop.f32.mrf.mxu1  ;;  %v1926_v12 = vpop.f32.mrf.mxu0 }
 0x25f   :  { %v2496_v13 = vmul.f32 -1.442695, %v1923_v8  ;;  %v1925_v16 = vadd.f32 %v1924_v14, %v1884_v15  ;;  %v687_v8 = vrot.slane %v3850_v1, %v686_v6 }
 0x260   :  { %v1886_v17 = vpop.f32.mrf.mxu1  ;;  %v1927_v18 = vpop.f32.mrf.mxu0 }
 0x261   :  { %2932 = vpow2.f32 %v2496_v13  ;;  %v2497_v19 = vmul.f32 -1.442695, %v1925_v16 }
 0x263   :  { %2934 = vpow2.f32 %v2497_v19 }
 0x26e   :  { %v2933_v49 = vpop.eup %2932 }
 0x26f   :  { %v2194_v20 = vadd.f32 1.0, %v2933_v49 }
 0x270   :  { %v2935_v21 = vpop.eup %2934 }
 0x271   :  { %2936 = vrcp.f32 %v2194_v20  ;;  %v2195_v52 = vadd.f32 1.0, %v2935_v21 }
 0x273   :  { %2938 = vrcp.f32 %v2195_v52 }
 0x27e   :  { %v2937_v22 = vpop.eup %2936 }
 0x27f   :  { %2215 = vst [vmem:[#allocation2] sm:$0xff] %v2937_v22 }
 0x280   :  { %v2939_v23 = vpop.eup %2938 }
 0x281   :  { %2216 = vst [vmem:[#allocation2 + $0x8] sm:$0xff] %v2939_v23 }
 0x29a   :  { %v1963_v26 = vpop.f32.mrf.mxu1  ;;  %v2004_v27 = vpop.f32.mrf.mxu0 }
 0x29b   :  { %v1964_v28 = vadd.f32 %v1963_v26, %v671_v24 }
 0x29c   :  { %v1965_v29 = vpop.f32.mrf.mxu1  ;;  %v2006_v30 = vpop.f32.mrf.mxu0 }
 0x29d   :  { %v2005_v31 = vadd.f32 %v2004_v27, %v1964_v28  ;;  %v1966_v32 = vadd.f32 %v1965_v29, %v675_v25 }
 0x29e   :  { %v1967_v33 = vpop.f32.mrf.mxu1  ;;  %v2008_v34 = vpop.f32.mrf.mxu0 }
 0x29f   :  { %v2498_v35 = vmul.f32 -1.442695, %v2005_v31  ;;  %v2007_v36 = vadd.f32 %v2006_v30, %v1966_v32 }
 0x2a0   :  { %v1968_v37 = vpop.f32.mrf.mxu1  ;;  %v2009_v38 = vpop.f32.mrf.mxu0 }
 0x2a1   :  { %2940 = vpow2.f32 %v2498_v35  ;;  %v2499_v39 = vmul.f32 -1.442695, %v2007_v36 }
 0x2a3   :  { %2942 = vpow2.f32 %v2499_v39 }
 0x2ae   :  { %v2941_v50 = vpop.eup %2940 }
 0x2af   :  { %v2196_v10 = vadd.f32 1.0, %v2941_v50 }
 0x2b0   :  { %v2943_v40 = vpop.eup %2942 }
 0x2b1   :  { %2944 = vrcp.f32 %v2196_v10  ;;  %v2197_v53 = vadd.f32 1.0, %v2943_v40 }
 0x2b3   :  { %2946 = vrcp.f32 %v2197_v53 }
 0x2be   :  { %v2945_v11 = vpop.eup %2944 }
 0x2bf   :  { %2217 = vst [vmem:[#allocation2 + $0x10] sm:$0xff] %v2945_v11 }
 0x2c0   :  { %v2947_v41 = vpop.eup %2946 }
 0x2c1   :  { %2218 = vst [vmem:[#allocation2 + $0x18] sm:$0xff] %v2947_v41 }
 0x2da   :  { %v2045_v46 = vpop.f32.mrf.mxu1 }
 0x2db   :  { %v2046_v47 = vadd.f32 %v2045_v46, %v679_v44  ;;  %v2086_v51 = vpop.f32.mrf.mxu0 }
 0x2dc   :  { %v2047_v54 = vpop.f32.mrf.mxu1 }
 0x2dd   :  { %v2087_v55 = vadd.f32 %v2086_v51, %v2046_v47  ;;  %v2048_v56 = vadd.f32 %v2047_v54, %v683_v45  ;;  %v2088_v57 = vpop.f32.mrf.mxu0 }
 0x2de   :  { %v2049_v58 = vpop.f32.mrf.mxu1 }
 0x2df   :  { %v2500_v59 = vmul.f32 -1.442695, %v2087_v55  ;;  %v2089_v60 = vadd.f32 %v2088_v57, %v2048_v56  ;;  %v2090_v61 = vpop.f32.mrf.mxu0 }
 0x2e0   :  { %v2050_v62 = vpop.f32.mrf.mxu1 }
 0x2e1   :  { %2948 = vpow2.f32 %v2500_v59  ;;  %v2501_v63 = vmul.f32 -1.442695, %v2089_v60  ;;  %v2091_v0 = vpop.f32.mrf.mxu0 }
 0x2e3   :  { %2950 = vpow2.f32 %v2501_v63 }
 0x2ee   :  { %v2949_v2 = vpop.eup %2948 }
 0x2ef   :  { %v2198_v3 = vadd.f32 1.0, %v2949_v2 }
 0x2f0   :  { %v2951_v4 = vpop.eup %2950 }
 0x2f1   :  { %2952 = vrcp.f32 %v2198_v3  ;;  %v2199_v5 = vadd.f32 1.0, %v2951_v4 }
 0x2f3   :  { %2954 = vrcp.f32 %v2199_v5 }
 0x2fa   :  { %v2522_v7 = vpop.f32.mrf.mxu1 }
 0x2fb   :  { %v2544_v14 = vpop.f32.mrf.mxu0 }
 0x2fc   :  { %v2523_v15 = vpop.f32.mrf.mxu1 }
 0x2fd   :  { %v2524_v9 = vadd.f32 %v2523_v15, %v2522_v7  ;;  %v2545_v12 = vpop.f32.mrf.mxu0 }
 0x2fe   :  { %v2953_v13 = vpop.eup %2952  ;;  %v2525_v16 = vpop.f32.mrf.mxu1  ;;  %v2546_v18 = vadd.f32 %v2545_v12, %v2544_v14 }
 0x2ff   :  { %2219 = vst [vmem:[#allocation2 + $0x20] sm:$0xff] %v2953_v13  ;;  %v2128_v17 = vadd.f32 %v2524_v9, %v687_v8  ;;  %v2547_v19 = vpop.f32.mrf.mxu0 }
 0x300   :  { %v2955_v49 = vpop.eup %2954  ;;  %v2526_v20 = vpop.f32.mrf.mxu1 }
 0x301   :  { %2220 = vst [vmem:[#allocation2 + $0x28] sm:$0xff] %v2955_v49  ;;  %v2168_v21 = vadd.f32 %v2546_v18, %v2128_v17  ;;  %v2548_v52 = vpop.f32.mrf.mxu0 }
 0x303   :  { %v2502_v22 = vmul.f32 -1.442695, %v2168_v21 }
 0x305   :  { %2956 = vpow2.f32 %v2502_v22 }
 0x312   :  { %v2957_v48 = vpop.eup %2956 }
 0x313   :  { %v2200_v23 = vadd.f32 1.0, %v2957_v48 }
 0x315   :  { %2958 = vrcp.f32 %v2200_v23 }
 0x322   :  { %v2959_v1 = vpop.eup %2958 }
 0x323   :  { %2221 = vst [vmem:[#allocation2 + $0x30] sm:$0xff] %v2959_v1 }
 0x324   :  { %2971 = shalt.err (!%p2968_p4)
}
 0x325   :  { %2231 = dma.vmem_to_hbm [thread:$0]  %s2229_s6, 896, %s3880_s7, [#allocation3]  }
 0x326   :  { %2980 = dma.done.wait [#allocation3], 896  }
 0x327   :  { %2981 = vsyncadd [#allocation3], 4294966400 }
 0x328   :  { %2235 = vsyncpa [#allocation3], 1 }

</bundles_post_ra>
